<compile_context>
chip_gen: v7x
topology: tpu7x:2x2x1
jax: 0.10.0
libtpu: 0.0.40
codegen_flags: <defaults>
</compile_context>

<pallas_src>
import jax
import jax.numpy as jnp
from jax.experimental import pallas as pl
from jax.experimental.pallas import tpu as pltpu

LANE = 128
SUBLANE = 8


def _round_up(n, m):
    return ((n + m - 1) // m) * m


def _pad2d(a, rows, cols):
    r, c = a.shape
    return jnp.pad(a, ((0, rows - r), (0, cols - c)))


def _mlp_kernel(x_ref, w1_ref, b1_ref, w2_ref, b2_ref, w3_ref, b3_ref,
                w4_ref, b4_ref, o_ref):
    # f32 x tile from HBM -> bf16 MXU operand (cast in-kernel; no wrapper pass).
    x = x_ref[...].astype(w1_ref.dtype)
    # Layer 1: Linear(in_dim, 128) + ReLU   (Dropout(0.5) == identity at inference)
    h = jnp.dot(x, w1_ref[...], preferred_element_type=jnp.float32)
    h = jnp.maximum(h + b1_ref[...], 0.0).astype(w2_ref.dtype)
    # Layer 2: Linear(128, 64->128 padded) + ReLU   (Dropout(0.4) == identity)
    h = jnp.dot(h, w2_ref[...], preferred_element_type=jnp.float32)
    h = jnp.maximum(h + b2_ref[...], 0.0).astype(w3_ref.dtype)
    # Layer 3: Linear(64, 32->128 padded) + ReLU    (Dropout(0.3) == identity)
    h = jnp.dot(h, w3_ref[...], preferred_element_type=jnp.float32)
    h = jnp.maximum(h + b3_ref[...], 0.0).astype(w4_ref.dtype)
    # Layer 4: Linear(32, out_dim) -- MXU runs on the 128-padded w4, then the f32
    # accumulator is sliced to out_dim in-register and stored with a masked vst.
    acc = jnp.dot(h, w4_ref[...], preferred_element_type=jnp.float32)
    out_dim = o_ref.shape[-1]
    o_ref[...] = (acc[:, :out_dim] + b4_ref[...]).astype(o_ref.dtype)


def frame_nn_forward(x, params, *, block_b=None, compute_dtype=jnp.bfloat16):
    """Fused forward for FrameNN.

    x: (B, in_dim) float32.  params: dict of W (in,out) / b (1,out) in float32.
    Returns (B, out_dim) float32.
    """
    B, in_dim = x.shape
    out_dim = params["w4"].shape[1]

    # ---- weights: pad hidden dims to 128 lanes (exact: zero cols + zero bias) ----
    h1_p = _round_up(params["w1"].shape[1], LANE)   # 128
    h2_p = _round_up(params["w2"].shape[1], LANE)   # 64  -> 128
    h3_p = _round_up(params["w3"].shape[1], LANE)   # 32  -> 128
    out_p = _round_up(out_dim, LANE)                # e.g. 16 -> 128 (sliced in-kernel)

    w1 = _pad2d(params["w1"], in_dim, h1_p).astype(compute_dtype)   # K unpadded
    w2 = _pad2d(params["w2"], h1_p, h2_p).astype(compute_dtype)
    w3 = _pad2d(params["w3"], h2_p, h3_p).astype(compute_dtype)
    w4 = _pad2d(params["w4"], h3_p, out_p).astype(compute_dtype)
    b1 = _pad2d(params["b1"], 1, h1_p)              # biases kept f32 (epilogue math)
    b2 = _pad2d(params["b2"], 1, h2_p)
    b3 = _pad2d(params["b3"], 1, h3_p)
    b4 = params["b4"]                               # (1, out_dim), unpadded

    # ---- batch tiling: pad only to a multiple of 8, cdiv grid, boundary masking ----
    B_pad = _round_up(B, SUBLANE)
    x_in = x if B_pad == B else jnp.pad(x, ((0, B_pad - B), (0, 0)))

    if block_b is None:
        # >=2 grid steps (v7x has 2 TCs) once B_pad > 8, capped for VMEM on v7x.
        block_b = max(SUBLANE, min(4096, _round_up(pl.cdiv(B_pad, 2), SUBLANE)))
    block_b = _round_up(block_b, SUBLANE)
    grid = (pl.cdiv(B_pad, block_b),)

    # Weights/biases: constant index_map -> stay resident in VMEM across the grid.
    def w_spec(shape):
        return pl.BlockSpec(shape, lambda i: (0, 0))

    in_specs = [
        pl.BlockSpec((block_b, in_dim), lambda i: (i, 0)),   # x tile (f32, unpadded)
        w_spec(w1.shape), w_spec(b1.shape),
        w_spec(w2.shape), w_spec(b2.shape),
        w_spec(w3.shape), w_spec(b3.shape),
        w_spec(w4.shape), w_spec(b4.shape),
    ]
    out_spec = pl.BlockSpec((block_b, out_dim), lambda i: (i, 0))  # unpadded output

    # ---- scoped-VMEM budget: footprint + ~30% + small Mosaic-scratch headroom ------
    csize = jnp.dtype(compute_dtype).itemsize
    w_bytes = ((w1.size + w2.size + w3.size + w4.size) * csize
               + (b1.size + b2.size + b3.size + b4.size) * 4)
    vmem_bytes = (
        2 * block_b * in_dim * 4        # x tile (f32), double-buffered
        + 2 * block_b * out_dim * 4     # out tile (f32), double-buffered
        + 2 * w_bytes                   # resident weights/biases
        + 4 * block_b * LANE * 4        # f32 activation working set (generous)
        + 3 * block_b * LANE * csize    # bf16 activation copies
    )
    vmem_limit = max(int(1.3 * vmem_bytes) + (2 << 20), 8 << 20)

    out = pl.pallas_call(
        _mlp_kernel,
        out_shape=jax.ShapeDtypeStruct((B_pad, out_dim), jnp.float32),
        grid_spec=pltpu.PrefetchScalarGridSpec(
            num_scalar_prefetch=0,
            grid=grid,
            in_specs=in_specs,
            out_specs=out_spec,
        ),
        compiler_params=pltpu.CompilerParams(
            dimension_semantics=("parallel",),
            vmem_limit_bytes=vmem_limit),
    )(x_in, w1, b1, w2, b2, w3, b3, w4, b4)

    return out if B_pad == B else out[:B]


def init_params(key, in_dim, out_dim, max_dim=128):
    """Deterministic synthetic init, PyTorch-style uniform(-1/sqrt(fan_in), +)."""
    dims = [(in_dim, max_dim), (max_dim, max_dim // 2),
            (max_dim // 2, max_dim // 4), (max_dim // 4, out_dim)]
    params = {}
    for idx, (fan_in, fan_out) in enumerate(dims, start=1):
        key, kw, kb = jax.random.split(key, 3)
        bound = 1.0 / jnp.sqrt(fan_in)
        params[f"w{idx}"] = jax.random.uniform(
            kw, (fan_in, fan_out), jnp.float32, -bound, bound)
        # biases kept 2D (1, fan_out) for clean TPU lane layout / broadcasting
        params[f"b{idx}"] = jax.random.uniform(
            kb, (1, fan_out), jnp.float32, -bound, bound)
    return params


def frame_nn_ref(x, p):
    h = jnp.maximum(x @ p["w1"] + p["b1"], 0.0)
    h = jnp.maximum(h @ p["w2"] + p["b2"], 0.0)
    h = jnp.maximum(h @ p["w3"] + p["b3"], 0.0)
    return h @ p["w4"] + p["b4"]


if __name__ == "__main__":
    key = jax.random.PRNGKey(0)
    k_param, k_x, k_x2 = jax.random.split(key, 3)

    B, in_dim, out_dim = 8, 32, 16
    params = init_params(k_param, in_dim, out_dim, max_dim=128)

    # Small aligned batch.
    x = jax.random.normal(k_x, (B, in_dim), jnp.float32)
    out = jax.block_until_ready(frame_nn_forward(x, params))
    ref = frame_nn_ref(x, params)
    assert out.shape == (B, out_dim)
    # bf16 matmul operands (f32 accumulation) -> loosened tolerance vs. f32 reference.
    assert jnp.allclose(out, ref, atol=3e-2, rtol=3e-2)

    # Ragged batch (not a multiple of 8) exercises the pad-to-8 / cdiv-grid path.
    B2 = 50
    x2 = jax.random.normal(k_x2, (B2, in_dim), jnp.float32)
    out2 = jax.block_until_ready(frame_nn_forward(x2, params))
    ref2 = frame_nn_ref(x2, params)
    assert out2.shape == (B2, out_dim)
    assert jnp.allclose(out2, ref2, atol=3e-2, rtol=3e-2)

    # Larger batch: multi-step grid with a partial last block (boundary masking).
    B3 = 2056
    x3 = jax.random.normal(k_x, (B3, in_dim), jnp.float32)
    out3 = jax.block_until_ready(frame_nn_forward(x3, params, block_b=1024))
    ref3 = frame_nn_ref(x3, params)
    assert out3.shape == (B3, out_dim)
    assert jnp.allclose(out3, ref3, atol=3e-2, rtol=3e-2)

    print("KERNEL_OK")
</pallas_src>

<mosaic_0001>
module attributes {stable_mosaic.version = 11 : i64} {
  func.func @_mlp_kernel(%arg0: i32, %arg1: memref<8x32xf32, #tpu.memory_space<vmem>>, %arg2: memref<32x128xbf16, #tpu.memory_space<vmem>>, %arg3: memref<1x128xf32, #tpu.memory_space<vmem>>, %arg4: memref<128x128xbf16, #tpu.memory_space<vmem>>, %arg5: memref<1x128xf32, #tpu.memory_space<vmem>>, %arg6: memref<128x128xbf16, #tpu.memory_space<vmem>>, %arg7: memref<1x128xf32, #tpu.memory_space<vmem>>, %arg8: memref<128x128xbf16, #tpu.memory_space<vmem>>, %arg9: memref<1x16xf32, #tpu.memory_space<vmem>>, %arg10: memref<8x16xf32, #tpu.memory_space<vmem>>) attributes {dimension_semantics = [#tpu.dimension_semantics<parallel>], iteration_bounds = array<i64: 1>, scalar_prefetch = 0 : i64, scratch_operands = 0 : i64, tpu.core_type = #tpu.core_type<tc>, window_params = [{transform_indices = @transform_0, window_bounds = array<i64: 8, 32>}, {pipeline_mode = #tpu.pipeline_mode<synchronous>, transform_indices = @transform_1, window_bounds = array<i64: 32, 128>}, {pipeline_mode = #tpu.pipeline_mode<synchronous>, transform_indices = @transform_2, window_bounds = array<i64: 1, 128>}, {pipeline_mode = #tpu.pipeline_mode<synchronous>, transform_indices = @transform_3, window_bounds = array<i64: 128, 128>}, {pipeline_mode = #tpu.pipeline_mode<synchronous>, transform_indices = @transform_4, window_bounds = array<i64: 1, 128>}, {pipeline_mode = #tpu.pipeline_mode<synchronous>, transform_indices = @transform_5, window_bounds = array<i64: 128, 128>}, {pipeline_mode = #tpu.pipeline_mode<synchronous>, transform_indices = @transform_6, window_bounds = array<i64: 1, 128>}, {pipeline_mode = #tpu.pipeline_mode<synchronous>, transform_indices = @transform_7, window_bounds = array<i64: 128, 128>}, {pipeline_mode = #tpu.pipeline_mode<synchronous>, transform_indices = @transform_8, window_bounds = array<i64: 1, 16>}, {transform_indices = @transform_9, window_bounds = array<i64: 8, 16>}]} {
    %c0 = arith.constant 0 : index
    %c0_0 = arith.constant 0 : index
    %0 = vector.load %arg1[%c0, %c0_0] : memref<8x32xf32, #tpu.memory_space<vmem>>, vector<8x32xf32>
    %1 = arith.truncf %0 : vector<8x32xf32> to vector<8x32xbf16>
    %c0_1 = arith.constant 0 : index
    %c0_2 = arith.constant 0 : index
    %2 = vector.load %arg2[%c0_1, %c0_2] : memref<32x128xbf16, #tpu.memory_space<vmem>>, vector<32x128xbf16>
    %cst = arith.constant dense<0.000000e+00> : vector<8x128xf32>
    %3 = tpu.matmul %1, %2, %cst {dimension_numbers = #tpu.dot_dimension_numbers<[1], [0], [0], [1], [0, 0, 1, 1], [], []>} : vector<8x32xbf16>, vector<32x128xbf16>, vector<8x128xf32> -> vector<8x128xf32>
    %c0_3 = arith.constant 0 : index
    %c0_4 = arith.constant 0 : index
    %4 = vector.load %arg3[%c0_3, %c0_4] : memref<1x128xf32, #tpu.memory_space<vmem>>, vector<1x128xf32>
    %5 = vector.broadcast %4 : vector<1x128xf32> to vector<8x128xf32>
    %6 = arith.addf %3, %5 : vector<8x128xf32>
    %cst_5 = arith.constant 0.000000e+00 : f32
    %7 = vector.broadcast %cst_5 : f32 to vector<8x128xf32>
    %8 = arith.maximumf %6, %7 : vector<8x128xf32>
    %9 = arith.truncf %8 : vector<8x128xf32> to vector<8x128xbf16>
    %c0_6 = arith.constant 0 : index
    %c0_7 = arith.constant 0 : index
    %10 = vector.load %arg4[%c0_6, %c0_7] : memref<128x128xbf16, #tpu.memory_space<vmem>>, vector<128x128xbf16>
    %cst_8 = arith.constant dense<0.000000e+00> : vector<8x128xf32>
    %11 = tpu.matmul %9, %10, %cst_8 {dimension_numbers = #tpu.dot_dimension_numbers<[1], [0], [0], [1], [0, 0, 1, 1], [], []>} : vector<8x128xbf16>, vector<128x128xbf16>, vector<8x128xf32> -> vector<8x128xf32>
    %c0_9 = arith.constant 0 : index
    %c0_10 = arith.constant 0 : index
    %12 = vector.load %arg5[%c0_9, %c0_10] : memref<1x128xf32, #tpu.memory_space<vmem>>, vector<1x128xf32>
    %13 = vector.broadcast %12 : vector<1x128xf32> to vector<8x128xf32>
    %14 = arith.addf %11, %13 : vector<8x128xf32>
    %cst_11 = arith.constant 0.000000e+00 : f32
    %15 = vector.broadcast %cst_11 : f32 to vector<8x128xf32>
    %16 = arith.maximumf %14, %15 : vector<8x128xf32>
    %17 = arith.truncf %16 : vector<8x128xf32> to vector<8x128xbf16>
    %c0_12 = arith.constant 0 : index
    %c0_13 = arith.constant 0 : index
    %18 = vector.load %arg6[%c0_12, %c0_13] : memref<128x128xbf16, #tpu.memory_space<vmem>>, vector<128x128xbf16>
    %cst_14 = arith.constant dense<0.000000e+00> : vector<8x128xf32>
    %19 = tpu.matmul %17, %18, %cst_14 {dimension_numbers = #tpu.dot_dimension_numbers<[1], [0], [0], [1], [0, 0, 1, 1], [], []>} : vector<8x128xbf16>, vector<128x128xbf16>, vector<8x128xf32> -> vector<8x128xf32>
    %c0_15 = arith.constant 0 : index
    %c0_16 = arith.constant 0 : index
    %20 = vector.load %arg7[%c0_15, %c0_16] : memref<1x128xf32, #tpu.memory_space<vmem>>, vector<1x128xf32>
    %21 = vector.broadcast %20 : vector<1x128xf32> to vector<8x128xf32>
    %22 = arith.addf %19, %21 : vector<8x128xf32>
    %cst_17 = arith.constant 0.000000e+00 : f32
    %23 = vector.broadcast %cst_17 : f32 to vector<8x128xf32>
    %24 = arith.maximumf %22, %23 : vector<8x128xf32>
    %25 = arith.truncf %24 : vector<8x128xf32> to vector<8x128xbf16>
    %c0_18 = arith.constant 0 : index
    %c0_19 = arith.constant 0 : index
    %26 = vector.load %arg8[%c0_18, %c0_19] : memref<128x128xbf16, #tpu.memory_space<vmem>>, vector<128x128xbf16>
    %cst_20 = arith.constant dense<0.000000e+00> : vector<8x128xf32>
    %27 = tpu.matmul %25, %26, %cst_20 {dimension_numbers = #tpu.dot_dimension_numbers<[1], [0], [0], [1], [0, 0, 1, 1], [], []>} : vector<8x128xbf16>, vector<128x128xbf16>, vector<8x128xf32> -> vector<8x128xf32>
    %28 = vector.extract_strided_slice %27 {offsets = [0, 0], sizes = [8, 16], strides = [1, 1]} : vector<8x128xf32> to vector<8x16xf32>
    %c0_21 = arith.constant 0 : index
    %c0_22 = arith.constant 0 : index
    %29 = vector.load %arg9[%c0_21, %c0_22] : memref<1x16xf32, #tpu.memory_space<vmem>>, vector<1x16xf32>
    %30 = vector.broadcast %29 : vector<1x16xf32> to vector<8x16xf32>
    %31 = arith.addf %28, %30 : vector<8x16xf32>
    %c0_23 = arith.constant 0 : index
    %c0_24 = arith.constant 0 : index
    %32 = vector.load %arg10[%c0_23, %c0_24] : memref<8x16xf32, #tpu.memory_space<vmem>>, vector<8x16xf32>
    tpu.vector_store %arg10[%c0_23, %c0_24], %31 {strides = array<i32>} : memref<8x16xf32, #tpu.memory_space<vmem>>, vector<8x16xf32>,
    return
  }
  func.func @transform_0(%arg0: i32) -> (i32, i32) {
    %c0_i32 = arith.constant 0 : i32
    %c0_i32_0 = arith.constant 0 : i32
    return %arg0, %c0_i32 : i32, i32
  }
  func.func @transform_1(%arg0: i32) -> (i32, i32) {
    %c0_i32 = arith.constant 0 : i32
    %c0_i32_0 = arith.constant 0 : i32
    %c0_i32_1 = arith.constant 0 : i32
    return %c0_i32, %c0_i32_0 : i32, i32
  }
  func.func @transform_2(%arg0: i32) -> (i32, i32) {
    %c0_i32 = arith.constant 0 : i32
    %c0_i32_0 = arith.constant 0 : i32
    %c0_i32_1 = arith.constant 0 : i32
    return %c0_i32, %c0_i32_0 : i32, i32
  }
  func.func @transform_3(%arg0: i32) -> (i32, i32) {
    %c0_i32 = arith.constant 0 : i32
    %c0_i32_0 = arith.constant 0 : i32
    %c0_i32_1 = arith.constant 0 : i32
    return %c0_i32, %c0_i32_0 : i32, i32
  }
  func.func @transform_4(%arg0: i32) -> (i32, i32) {
    %c0_i32 = arith.constant 0 : i32
    %c0_i32_0 = arith.constant 0 : i32
    %c0_i32_1 = arith.constant 0 : i32
    return %c0_i32, %c0_i32_0 : i32, i32
  }
  func.func @transform_5(%arg0: i32) -> (i32, i32) {
    %c0_i32 = arith.constant 0 : i32
    %c0_i32_0 = arith.constant 0 : i32
    %c0_i32_1 = arith.constant 0 : i32
    return %c0_i32, %c0_i32_0 : i32, i32
  }
  func.func @transform_6(%arg0: i32) -> (i32, i32) {
    %c0_i32 = arith.constant 0 : i32
    %c0_i32_0 = arith.constant 0 : i32
    %c0_i32_1 = arith.constant 0 : i32
    return %c0_i32, %c0_i32_0 : i32, i32
  }
  func.func @transform_7(%arg0: i32) -> (i32, i32) {
    %c0_i32 = arith.constant 0 : i32
    %c0_i32_0 = arith.constant 0 : i32
    %c0_i32_1 = arith.constant 0 : i32
    return %c0_i32, %c0_i32_0 : i32, i32
  }
  func.func @transform_8(%arg0: i32) -> (i32, i32) {
    %c0_i32 = arith.constant 0 : i32
    %c0_i32_0 = arith.constant 0 : i32
    %c0_i32_1 = arith.constant 0 : i32
    return %c0_i32, %c0_i32_0 : i32, i32
  }
  func.func @transform_9(%arg0: i32) -> (i32, i32) {
    %c0_i32 = arith.constant 0 : i32
    %c0_i32_0 = arith.constant 0 : i32
    return %arg0, %c0_i32 : i32, i32
  }
}

</mosaic_0001>

<bundles_post_ra>
// kernel: tpu_custom_call.1
= control target key start
LH: loop header
LB: loop body
LE: loop exit
PB: predicated region body
PF: predicated region fallthrough
CT: control target
= control target key end

     0   :  { %14 = vsyncpa [#allocation3], 0  ;;  %s1023_s0 = inlined_call_operand.hbm [shape: f32[8,32], index: 0, kind: input, shape index: {}]   ;;  %s1024_s1 = inlined_call_operand.hbm [shape: bf16[32,128], index: 1, kind: input, shape index: {}]   ;;  %s1025_s2 = inlined_call_operand.vmem [shape: f32[1,128], index: 2, kind: input, shape index: {}]   ;;  %s1026_s3 = inlined_call_operand.hbm [shape: bf16[128,128], index: 3, kind: input, shape index: {}]   ;;  %s1027_s4 = inlined_call_operand.vmem [shape: f32[1,128], index: 4, kind: input, shape index: {}]   ;;  %s1028_s5 = inlined_call_operand.hbm [shape: bf16[128,128], index: 5, kind: input, shape index: {}]   ;;  %s1029_s6 = inlined_call_operand.vmem [shape: f32[1,128], index: 6, kind: input, shape index: {}]   ;;  %s1030_s7 = inlined_call_operand.hbm [shape: bf16[128,128], index: 7, kind: input, shape index: {}]   ;;  %s1031_s8 = inlined_call_operand.vmem [shape: f32[1,16], index: 8, kind: input, shape index: {}]   ;;  %s1032_s9 = inlined_call_operand.hbm [shape: f32[8,16], index: 9, kind: output, shape index: {}]  }
   0x1   :  { %15 = vsyncpa [#allocation6], 0 }
   0x2   :  { %16 = vsyncpa [#allocation9], 0 }
   0x3   :  { %17 = vsyncpa [#allocation4], 0  ;;  %s833_s30 = smov [#allocation5]   ;;  %s693_s13 = scalar_lea.hbm %s1024_s1, 256 }
   0x4   :  { %s33_s10 = sshll.u32 %s833_s30, 4  ;;  %p694_p0 = scmp.ne.s32.totalorder %s1024_s1, %s693_s13  ;;  %s34_s10 = int_to_ptr.vmem [resolvable:$true] %s33_s10 }
   0x5   :  { %p697_p1 = scmp.lt.u32.totalorder %s693_s13, %s1024_s1 }
   0x7   :  { %p699_p2 = pnand %p697_p1, %p694_p0 }
   0x9   :  { %702 = shalt.err (!%p699_p2)
}
   0xa   :  { %s703_s18 = scalar_lea.vmem %s34_s10, 256  ;;  %p708_p4 = scmp.lt.s32.totalorder %s34_s10, %s34_s10 }
   0xb   :  { %p704_p3 = scmp.ne.s32.totalorder %s34_s10, %s703_s18  ;;  %p709_p5 = scmp.lt.s32.totalorder %s703_s18, %s703_s18 }
   0xd   :  { %p710_p6 = por %p709_p5, %p708_p4 }
   0xf   :  { %p711_p7 = pnand %p710_p6, %p704_p3 }
  0x11   :  { %714 = shalt.err (!%p711_p7)
}
  0x12   :  { %s834_s19 = smov 64   ;;  %s835_s20 = smov 4  }
  0x13   :  { %39 = dma.hbm_to_vmem [thread:$0]  %s1024_s1, 256, %s34_s10, [#allocation6], %s834_s19, %s834_s19, %s835_s20  }
  0x14   :  { %s836_s23 = smov [#allocation8]   ;;  %s837_s25 = smov [#allocation2]  }
  0x15   :  { %s61_s24 = sshll.u32 %s836_s23, 4  ;;  %s24_s26 = sshll.u32 %s837_s25, 4  ;;  %s62_s24 = int_to_ptr.vmem [resolvable:$true] %s61_s24  ;;  %s25_s26 = int_to_ptr.vmem [resolvable:$true] %s24_s26 }
  0x16   :  { %s715_s29 = scalar_lea.hbm %s1028_s5, 1024 }
  0x17   :  { %p716_p8 = scmp.ne.s32.totalorder %s1028_s5, %s715_s29  ;;  %p719_p9 = scmp.lt.u32.totalorder %s715_s29, %s1028_s5 }
  0x19   :  { %p721_p10 = pnand %p719_p9, %p716_p8 }
  0x1b   :  { %724 = shalt.err (!%p721_p10)
}
  0x1c   :  { %s725_s1 = scalar_lea.vmem %s62_s24, 1024  ;;  %p730_p12 = scmp.lt.s32.totalorder %s62_s24, %s62_s24 }
  0x1d   :  { %p726_p11 = scmp.ne.s32.totalorder %s62_s24, %s725_s1  ;;  %p731_p13 = scmp.lt.s32.totalorder %s725_s1, %s725_s1 }
  0x1f   :  { %p732_p0 = por %p731_p13, %p730_p12 }
  0x21   :  { %p733_p1 = pnand %p732_p0, %p726_p11 }
  0x23   :  { %736 = shalt.err (!%p733_p1)
}
  0x24   :  { %67 = dma.hbm_to_vmem [thread:$0]  %s1028_s5, 1024, %s62_s24, [#allocation9], %s834_s19, %s834_s19, %s835_s20  }
  0x25   :  { %s737_s17 = scalar_lea.hbm %s1023_s0, 128 }
  0x26   :  { %p738_p2 = scmp.ne.s32.totalorder %s1023_s0, %s737_s17  ;;  %p741_p3 = scmp.lt.u32.totalorder %s737_s17, %s1023_s0 }
  0x28   :  { %p743_p4 = pnand %p741_p3, %p738_p2 }
  0x2a   :  { %746 = shalt.err (!%p743_p4)
}
  0x2b   :  { %s747_s25 = scalar_lea.vmem %s25_s26, 128  ;;  %p752_p6 = scmp.lt.s32.totalorder %s25_s26, %s25_s26 }
  0x2c   :  { %p748_p5 = scmp.ne.s32.totalorder %s25_s26, %s747_s25  ;;  %p753_p7 = scmp.lt.s32.totalorder %s747_s25, %s747_s25 }
  0x2e   :  { %p754_p8 = por %p753_p7, %p752_p6 }
  0x30   :  { %p755_p9 = pnand %p754_p8, %p748_p5 }
  0x32   :  { %758 = shalt.err (!%p755_p9)
}
  0x33   :  { %27 = dma.hbm_to_vmem [thread:$0]  %s1023_s0, 128, %s25_s26, [#allocation3]  }
  0x34   :  { %s838_s27 = smov [#allocation7]   ;;  %s839_s29 = smov [#allocation10]  }
  0x35   :  { %s47_s28 = sshll.u32 %s838_s27, 4  ;;  %s75_s30 = sshll.u32 %s839_s29, 4  ;;  %s48_s28 = int_to_ptr.vmem [resolvable:$true] %s47_s28  ;;  %s76_s30 = int_to_ptr.vmem [resolvable:$true] %s75_s30 }
  0x36   :  { %s759_s13 = scalar_lea.hbm %s1026_s3, 1024 }
  0x37   :  { %p760_p10 = scmp.ne.s32.totalorder %s1026_s3, %s759_s13  ;;  %p763_p11 = scmp.lt.u32.totalorder %s759_s13, %s1026_s3 }
  0x39   :  { %p765_p12 = pnand %p763_p11, %p760_p10 }
  0x3b   :  { %768 = shalt.err (!%p765_p12)
}
  0x3c   :  { %s769_s0 = scalar_lea.vmem %s48_s28, 1024  ;;  %p774_p0 = scmp.lt.s32.totalorder %s48_s28, %s48_s28 }
  0x3d   :  { %p770_p13 = scmp.ne.s32.totalorder %s48_s28, %s769_s0  ;;  %p775_p1 = scmp.lt.s32.totalorder %s769_s0, %s769_s0 }
  0x3f   :  { %p776_p2 = por %p775_p1, %p774_p0 }
  0x41   :  { %p777_p3 = pnand %p776_p2, %p770_p13 }
  0x43   :  { %780 = shalt.err (!%p777_p3)
}
  0x44   :  { %53 = dma.hbm_to_vmem [thread:$0]  %s1026_s3, 1024, %s48_s28, [#allocation6], %s834_s19, %s834_s19, %s835_s20  }
  0x45   :  { %s781_s21 = scalar_lea.hbm %s1030_s7, 1024 }
  0x46   :  { %p782_p4 = scmp.ne.s32.totalorder %s1030_s7, %s781_s21  ;;  %p785_p5 = scmp.lt.u32.totalorder %s781_s21, %s1030_s7 }
  0x48   :  { %p787_p6 = pnand %p785_p5, %p782_p4 }
  0x4a   :  { %790 = shalt.err (!%p787_p6)
}
  0x4b   :  { %s791_s24 = scalar_lea.vmem %s76_s30, 1024  ;;  %p796_p8 = scmp.lt.s32.totalorder %s76_s30, %s76_s30 }
  0x4c   :  { %p792_p7 = scmp.ne.s32.totalorder %s76_s30, %s791_s24  ;;  %p797_p9 = scmp.lt.s32.totalorder %s791_s24, %s791_s24 }
  0x4e   :  { %p798_p10 = por %p797_p9, %p796_p8 }
  0x50   :  { %p799_p11 = pnand %p798_p10, %p792_p7 }
  0x52   :  { %802 = shalt.err (!%p799_p11)
}
  0x53   :  { %81 = dma.hbm_to_vmem [thread:$0]  %s1030_s7, 1024, %s76_s30, [#allocation9], %s834_s19, %s834_s19, %s835_s20  }
  0x54   :  { %825 = dma.done.wait [#allocation3], 128  }
  0x55   :  { %826 = vsyncadd [#allocation3], 4294967168 }
  0x56   :  { %827 = dma.done.wait [#allocation6], 1280  }
  0x57   :  { %828 = vsyncadd [#allocation6], 4294966016 }
  0x58   :  { %829 = dma.done.wait [#allocation9], 2048  }
  0x59   :  { %830 = vsyncadd [#allocation9], 4294965248  ;;  %v840_v0 = vmov 0.0   ;;  %vm841_vm0 = vmmov 0   ;;  %v667_v1 = vld [vmem:[#allocation5] sm:$0xff]   ;;  %v668_v2 = vld [vmem:[#allocation5 + $0x8] sm:$0xff]  }
  0x5a   :  { %589 = vmatprep.subr.bf16.mxu0 %v840_v0  ;;  %593 = vmatprep.mubr.msk.bf16.mxu0 %vm841_vm0, %v840_v0  ;;  %v100_v3 = vld [vmem:[#allocation2] sm:$0xff]  ;;  %v669_v4 = vld [vmem:[#allocation7] sm:$0xff]   ;;  %vm125_vm1 = vcmask 261120   ;;  %v671_v7 = vld [vmem:[#allocation7 + $0x10] sm:$0xff]   ;;  %s842_s11 = smov [#allocation11]   ;;  %vm509_vm2 = vcmask 130048  }
  0x5b   :  { %597 = vmatprep.subr.bf16.mxu1 %v840_v0  ;;  %613 = vmatprep.mubr.msk.bf16.mxu1 %vm841_vm0, %v840_v0  ;;  %v101_v5 = vpack.c.bf16 %v100_v3, %v100_v3  ;;  %v670_v6 = vld [vmem:[#allocation7 + $0x8] sm:$0xff]   ;;  %v672_v8 = vld [vmem:[#allocation7 + $0x18] sm:$0xff]   ;;  %v673_v9 = vld [vmem:[#allocation7 + $0x20] sm:$0xff]   ;;  %s517_s12 = sshll.u32 %s842_s11, 4  ;;  %s518_s12 = int_to_ptr.vmem [resolvable:$true] %s517_s12 }
  0x5c   :  { %590 = vmatpush3.bf16.msra.mxu0 %v667_v1  ;;  %598 = vmatpush3.bf16.msra.mxu1 %v669_v4  ;;  %v674_v10 = vld [vmem:[#allocation7 + $0x28] sm:$0xff]   ;;  %v675_v11 = vld [vmem:[#allocation7 + $0x30] sm:$0xff]   ;;  %v676_v12 = vld [vmem:[#allocation7 + $0x38] sm:$0xff]   ;;  %p808_p13 = scmp.lt.s32.totalorder %s518_s12, %s518_s12 }
  0x5d   :  { %591 = vmatprep.subr.bf16.mxu0 %v840_v0  ;;  %599 = vmatprep.subr.bf16.mxu1 %v840_v0  ;;  %v677_v13 = vld [vmem:[#allocation8] sm:$0xff]   ;;  %v678_v14 = vld [vmem:[#allocation8 + $0x8] sm:$0xff]   ;;  %v679_v15 = vld [vmem:[#allocation8 + $0x10] sm:$0xff]  }
  0x5e   :  { %v680_v16 = vld [vmem:[#allocation8 + $0x18] sm:$0xff]   ;;  %v681_v17 = vld [vmem:[#allocation8 + $0x20] sm:$0xff]   ;;  %v682_v18 = vld [vmem:[#allocation8 + $0x28] sm:$0xff]  }
  0x5f   :  { %v528_v19 = vld [vmem:[%s1025_s2] ss:$0 sm:$0xff]  ;;  %v683_v27 = vld [vmem:[#allocation8 + $0x30] sm:$0xff]   ;;  %v684_v28 = vld [vmem:[#allocation8 + $0x38] sm:$0xff]  }
  0x60   :  { %592 = vmatpush3.bf16.msra.mxu0 %v668_v2  ;;  %600 = vmatpush3.bf16.msra.mxu1 %v670_v6  ;;  %v685_v29 = vld [vmem:[#allocation10] sm:$0xff]   ;;  %v686_v30 = vld [vmem:[#allocation10 + $0x8] sm:$0xff]   ;;  %v687_v31 = vld [vmem:[#allocation10 + $0x10] sm:$0xff]  }
  0x61   :  { %617 = vmatprep.subr.bf16.mxu0 %v840_v0  ;;  %601 = vmatprep.subr.bf16.mxu1 %v840_v0  ;;  %v688_v32 = vld [vmem:[#allocation10 + $0x18] sm:$0xff]   ;;  %v689_v33 = vld [vmem:[#allocation10 + $0x20] sm:$0xff]   ;;  %v690_v34 = vld [vmem:[#allocation10 + $0x28] sm:$0xff]  }
  0x62   :  { %v532_v35 = vld [vmem:[%s1027_s4] ss:$0 sm:$0xff]  ;;  %v691_v43 = vld [vmem:[#allocation10 + $0x30] sm:$0xff]   ;;  %v692_v44 = vld [vmem:[#allocation10 + $0x38] sm:$0xff]  }
  0x63   :  { %594 = vmatmul.mubr.msk.bf16.vlgmr.msra.gmra.mrb[0].mxu0 %vm125_vm1, %v101_v5  ;;  %v541_v45 = vld [vmem:[%s1029_s6] ss:$0 sm:$0xff]  ;;  %s803_s6 = scalar_lea.vmem %s518_s12, 128 }
  0x64   :  { %633 = vmatprep.mubr.msk.bf16.mxu0 %vm841_vm0, %v840_v0  ;;  %602 = vmatpush3.bf16.msra.mxu1 %v671_v7  ;;  %v558_v53 = vld [vmem:[%s1031_s8] ss:$0 sm:$0xff]  ;;  %p804_p12 = scmp.ne.s32.totalorder %s518_s12, %s803_s6  ;;  %p809_p0 = scmp.lt.s32.totalorder %s803_s6, %s803_s6 }
  0x65   :  { %603 = vmatprep.subr.bf16.mxu1 %v840_v0  ;;  %618 = vmatpush3.bf16.msra.mxu0 %v677_v13 }
  0x66   :  { %619 = vmatprep.subr.bf16.mxu0 %v840_v0  ;;  %p810_p1 = por %p809_p0, %p808_p13 }
  0x68   :  { %604 = vmatpush3.bf16.msra.mxu1 %v672_v8  ;;  %p811_p2 = pnand %p810_p1, %p804_p12 }
  0x69   :  { %605 = vmatprep.subr.bf16.mxu1 %v840_v0  ;;  %620 = vmatpush3.bf16.msra.mxu0 %v678_v14 }
  0x6a   :  { %621 = vmatprep.subr.bf16.mxu0 %v840_v0 }
  0x6c   :  { %606 = vmatpush3.bf16.msra.mxu1 %v673_v9 }
  0x6d   :  { %607 = vmatprep.subr.bf16.mxu1 %v840_v0  ;;  %622 = vmatpush3.bf16.msra.mxu0 %v679_v15 }
  0x6e   :  { %623 = vmatprep.subr.bf16.mxu0 %v840_v0 }
  0x70   :  { %608 = vmatpush3.bf16.msra.mxu1 %v674_v10 }
  0x71   :  { %609 = vmatprep.subr.bf16.mxu1 %v840_v0  ;;  %624 = vmatpush3.bf16.msra.mxu0 %v680_v16 }
  0x72   :  { %625 = vmatprep.subr.bf16.mxu0 %v840_v0 }
  0x74   :  { %610 = vmatpush3.bf16.msra.mxu1 %v675_v11 }
  0x75   :  { %611 = vmatprep.subr.bf16.mxu1 %v840_v0  ;;  %626 = vmatpush3.bf16.msra.mxu0 %v681_v17 }
  0x76   :  { %627 = vmatprep.subr.bf16.mxu0 %v840_v0 }
  0x78   :  { %612 = vmatpush3.bf16.msra.mxu1 %v676_v12 }
  0x79   :  { %637 = vmatprep.subr.bf16.mxu1 %v840_v0  ;;  %628 = vmatpush3.bf16.msra.mxu0 %v682_v18 }
  0x7a   :  { %629 = vmatprep.subr.bf16.mxu0 %v840_v0 }
  0x7d   :  { %630 = vmatpush3.bf16.msra.mxu0 %v683_v27 }
  0x7e   :  { %631 = vmatprep.subr.bf16.mxu0 %v840_v0 }
  0x81   :  { %632 = vmatpush3.bf16.msra.mxu0 %v684_v28 }
 0x136   :  { %v163_v20 = vpop.f32.mrb[0].mxu0 }
 0x137   :  { %v164_v21 = vadd.f32 %v528_v19, %v163_v20  ;;  %v595_v22 = vpop.f32.mrb[1].mxu0 }
 0x138   :  { %v166_v23 = vpop.f32.mrb[2].mxu0 }
 0x139   :  { %v169_v24 = vmax.f32 %v164_v21, 0.0  ;;  %v596_v25 = vpop.f32.mrb[3].mxu0 }
 0x13b   :  { %v170_v26 = vpack.c.bf16 %v169_v24, %v169_v24 }
 0x13d   :  { %614 = vmatmul.mubr.bf16.vlgmr.msra.gmra.mrb[0].mxu1 %v170_v26 }
 0x13e   :  { %653 = vmatprep.mubr.msk.bf16.mxu1 %vm841_vm0, %v840_v0  ;;  %638 = vmatpush3.bf16.msra.mxu1 %v685_v29 }
 0x13f   :  { %639 = vmatprep.subr.bf16.mxu1 %v840_v0 }
 0x142   :  { %640 = vmatpush3.bf16.msra.mxu1 %v686_v30 }
 0x143   :  { %641 = vmatprep.subr.bf16.mxu1 %v840_v0 }
 0x146   :  { %642 = vmatpush3.bf16.msra.mxu1 %v687_v31 }
 0x147   :  { %643 = vmatprep.subr.bf16.mxu1 %v840_v0 }
 0x14a   :  { %644 = vmatpush3.bf16.msra.mxu1 %v688_v32 }
 0x14b   :  { %645 = vmatprep.subr.bf16.mxu1 %v840_v0 }
 0x14e   :  { %646 = vmatpush3.bf16.msra.mxu1 %v689_v33 }
 0x14f   :  { %647 = vmatprep.subr.bf16.mxu1 %v840_v0 }
 0x152   :  { %648 = vmatpush3.bf16.msra.mxu1 %v690_v34 }
 0x153   :  { %649 = vmatprep.subr.bf16.mxu1 %v840_v0 }
 0x156   :  { %650 = vmatpush3.bf16.msra.mxu1 %v691_v43 }
 0x157   :  { %651 = vmatprep.subr.bf16.mxu1 %v840_v0 }
 0x15a   :  { %652 = vmatpush3.bf16.msra.mxu1 %v692_v44 }
 0x210   :  { %v276_v36 = vpop.f32.mrb[0].mxu1 }
 0x211   :  { %v277_v37 = vadd.f32 %v532_v35, %v276_v36  ;;  %v615_v38 = vpop.f32.mrb[1].mxu1 }
 0x212   :  { %v279_v39 = vpop.f32.mrb[2].mxu1 }
 0x213   :  { %v282_v40 = vmax.f32 %v277_v37, 0.0  ;;  %v616_v41 = vpop.f32.mrb[3].mxu1 }
 0x215   :  { %v283_v42 = vpack.c.bf16 %v282_v40, %v282_v40 }
 0x217   :  { %634 = vmatmul.mubr.bf16.vlgmr.msra.gmra.mrb[4].mxu0 %v283_v42 }
 0x2ea   :  { %v389_v46 = vpop.f32.mrb[4].mxu0 }
 0x2eb   :  { %v390_v47 = vadd.f32 %v541_v45, %v389_v46  ;;  %v635_v48 = vpop.f32.mrb[5].mxu0 }
 0x2ec   :  { %v392_v49 = vpop.f32.mrb[6].mxu0 }
 0x2ed   :  { %v395_v50 = vmax.f32 %v390_v47, 0.0  ;;  %v636_v51 = vpop.f32.mrb[7].mxu0 }
 0x2ef   :  { %v396_v52 = vpack.c.bf16 %v395_v50, %v395_v50 }
 0x2f1   :  { %654 = vmatmul.mubr.bf16.vlgmr.msra.gmra.mrb[4].mxu1 %v396_v52 }
 0x3c4   :  { %v495_v54 = vpop.f32.mrb[4].mxu1 }
 0x3c5   :  { %v508_v55 = vadd.f32 %v558_v53, %v495_v54  ;;  %v655_v56 = vpop.f32.mrb[5].mxu1 }
 0x3c6   :  { %v498_v57 = vpop.f32.mrb[6].mxu1 }
 0x3c7   :  { %v656_v58 = vpop.f32.mrb[7].mxu1  ;;  %510 = vst.msk [vmem:[#allocation11] sm:$0xff] %vm509_vm2, %v508_v55 }
 0x3c8   :  { %814 = shalt.err (!%p811_p2)
}
 0x3c9   :  { %s815_s8 = scalar_lea.hbm %s1032_s9, 128 }
 0x3ca   :  { %p816_p3 = scmp.ne.s32.totalorder %s1032_s9, %s815_s8  ;;  %p819_p4 = scmp.lt.u32.totalorder %s815_s8, %s1032_s9 }
 0x3cc   :  { %p821_p5 = pnand %p819_p4, %p816_p3 }
 0x3ce   :  { %824 = shalt.err (!%p821_p5)
}
 0x3cf   :  { %520 = dma.vmem_to_hbm [thread:$0]  %s518_s12, 128, %s1032_s9, [#allocation4]  }
 0x3d0   :  { %831 = dma.done.wait [#allocation4], 128  }
 0x3d1   :  { %832 = vsyncadd [#allocation4], 4294967168 }
 0x3d2   :  { %524 = vsyncpa [#allocation3], 1 }
 0x3d3   :  { %525 = vsyncpa [#allocation6], 1 }
 0x3d4   :  { %526 = vsyncpa [#allocation9], 1 }
 0x3d5   :  { %527 = vsyncpa [#allocation4], 1 }

</bundles_post_ra>
